<compile_context>
chip_gen: v5e
topology: v5e:2x2
jax: 0.10.0
libtpu: 0.0.40
codegen_flags: <defaults>
</compile_context>

<pallas_src>
import functools

import numpy as np
import jax
import jax.numpy as jnp
from jax.experimental import pallas as pl
from jax.experimental.pallas import tpu as pltpu


def _image_gradient_kernel(d_ref, d_hbm, o_ref, halo, sem, *, full_h):
    """d_ref: (1,1,TH,W) VMEM tile; d_hbm: full (N,1,H,W) in HBM; o_ref: (1,2,TH,W)."""
    n = pl.program_id(0)
    h = pl.program_id(1)

    th = d_ref.shape[2]
    w = d_ref.shape[3]

    # ---- kick off tiny halo-row DMAs (one row above / below this tile) ----------
    # Row indices are clamped into [0, H-1]; the fetched value is masked to zero at
    # the true image top / bottom below, so clamping never changes the result.
    row_top = jnp.maximum(h * th - 1, 0)
    row_bot = jnp.minimum(h * th + th, full_h - 1)
    top_cp = pltpu.make_async_copy(
        d_hbm.at[n, 0, pl.ds(row_top, 1), :], halo.at[0], sem.at[0])
    bot_cp = pltpu.make_async_copy(
        d_hbm.at[n, 0, pl.ds(row_bot, 1), :], halo.at[1], sem.at[1])
    top_cp.start()
    bot_cp.start()

    d = d_ref[0, 0]                                        # (TH, W)

    # ---- horizontal gradient: d[:, j+1] - d[:, j-1], zero-padded neighbors ------
    # (computed while the halo DMAs are in flight)
    col = jax.lax.broadcasted_iota(jnp.int32, (th, w), 1)
    right = jnp.where(col == w - 1, 0.0, pltpu.roll(d, shift=w - 1, axis=1))  # d[:, j+1]
    left = jnp.where(col == 0, 0.0, pltpu.roll(d, shift=1, axis=1))           # d[:, j-1]
    o_ref[0, 0] = (right - left).astype(o_ref.dtype)

    # ---- vertical gradient: d[i+1, :] - d[i-1, :], zero-padded neighbors --------
    top_cp.wait()
    bot_cp.wait()
    lrow = jax.lax.broadcasted_iota(jnp.int32, (th, w), 0)   # local row index
    grow = h * th + lrow                                     # global row index

    up = pltpu.roll(d, shift=1, axis=0)                      # d[i-1] (wrapped at i=0)
    up = jnp.where(lrow == 0, halo[0], up)                   # seam row from halo
    up = jnp.where(grow == 0, 0.0, up)                       # true image top -> 0

    down = pltpu.roll(d, shift=th - 1, axis=0)               # d[i+1] (wrapped at i=TH-1)
    down = jnp.where(lrow == th - 1, halo[1], down)          # seam row from halo
    down = jnp.where(grow == full_h - 1, 0.0, down)          # true image bottom -> 0

    o_ref[0, 1] = (down - up).astype(o_ref.dtype)


def _choose_tile_h(H, W, itemsize, max_bytes=8 << 20):
    """Largest multiple-of-8 divisor of H whose per-step pipelined footprint fits."""
    if H % 8 != 0:
        return H  # full-height block satisfies the (8,128) rule via "equals full dim"
    # footprint per grid step ~= (1 input + 2 output blocks) * 2 pipeline buffers
    cap = max(8, max_bytes // (6 * W * itemsize))
    if cap >= H:
        return H
    best = None
    for th in range(8, int(min(H, cap)) + 1, 8):
        if H % th == 0:
            best = th
    return best if best is not None else H


def image_gradient(depth, *, tile_h=None):
    """depth: (N, 1, H, W) -> (N, 2, H, W). Matches F.conv2d(depth, grad_kernel, padding=1)."""
    N, C, H, W = depth.shape
    assert C == 1, "ImageGradient expects a single-channel depth map"
    itemsize = jnp.dtype(depth.dtype).itemsize
    if tile_h is None:
        tile_h = _choose_tile_h(H, W, itemsize)
    assert H % tile_h == 0, "tile_h must divide H"
    n_h = H // tile_h

    kernel = functools.partial(_image_gradient_kernel, full_h=H)

    return pl.pallas_call(
        kernel,
        out_shape=jax.ShapeDtypeStruct((N, 2, H, W), depth.dtype),
        grid_spec=pltpu.PrefetchScalarGridSpec(
            num_scalar_prefetch=0,
            grid=(N, n_h),
            in_specs=[
                pl.BlockSpec((1, 1, tile_h, W), lambda n, h: (n, 0, h, 0)),
                pl.BlockSpec(memory_space=pl.ANY),   # raw HBM view for halo-row DMAs
            ],
            out_specs=pl.BlockSpec((1, 2, tile_h, W), lambda n, h: (n, 0, h, 0)),
            scratch_shapes=[
                pltpu.VMEM((2, 1, W), depth.dtype),   # [0]=row above tile, [1]=row below
                pltpu.SemaphoreType.DMA((2,)),
            ],
        ),
        compiler_params=pltpu.CompilerParams(
            dimension_semantics=("parallel", "parallel")),
        cost_estimate=pl.CostEstimate(
            flops=2 * N * H * W,
            transcendentals=0,
            bytes_accessed=3 * N * H * W * itemsize),
    )(depth, depth)


def _reference(depth_np):
    # numpy reference of F.conv2d(depth, gradient_kernel, stride=1, padding=1)
    N, _, H, W = depth_np.shape
    p = np.pad(depth_np[:, 0], ((0, 0), (1, 1), (1, 1)))
    dx = p[:, 1:H + 1, 2:W + 2] - p[:, 1:H + 1, 0:W]
    dy = p[:, 2:H + 2, 1:W + 1] - p[:, 0:H, 1:W + 1]
    return np.stack([dx, dy], axis=1)


if __name__ == "__main__":
    key = jax.random.PRNGKey(0)
    N, C, H, W = 2, 1, 32, 128
    depth = jax.random.uniform(key, (N, C, H, W), dtype=jnp.float32)

    # Multi-tile path: forces 4 H-tiles per image, exercising the halo DMAs at seams.
    out_tiled = jax.block_until_ready(image_gradient(depth, tile_h=8))
    # Default tile selection (single full-height block at this small size).
    out_full = jax.block_until_ready(image_gradient(depth))

    ref = _reference(np.asarray(depth))
    np.testing.assert_allclose(np.asarray(out_tiled), ref, rtol=1e-6, atol=1e-6)
    np.testing.assert_allclose(np.asarray(out_full), ref, rtol=1e-6, atol=1e-6)
    print("KERNEL_OK")
</pallas_src>

<mosaic_0001>
module attributes {stable_mosaic.version = 11 : i64} {
  func.func @_image_gradient_kernel(%arg0: i32, %arg1: i32, %arg2: memref<1x1x8x128xf32, #tpu.memory_space<vmem>>, %arg3: memref<2x1x32x128xf32, #tpu.memory_space<any>>, %arg4: memref<1x2x8x128xf32, #tpu.memory_space<vmem>>, %arg5: memref<2x1x128xf32, #tpu.memory_space<vmem>>, %arg6: memref<2x!tpu.dma_semaphore, #tpu.memory_space<semaphore_mem>>) attributes {dimension_semantics = [#tpu.dimension_semantics<parallel>, #tpu.dimension_semantics<parallel>], iteration_bounds = array<i64: 2, 4>, scalar_prefetch = 0 : i64, scratch_operands = 2 : i64, tpu.core_type = #tpu.core_type<tc>, window_params = [{transform_indices = @transform_0, window_bounds = array<i64: 1, 1, 8, 128>}, {}, {transform_indices = @transform_2, window_bounds = array<i64: 1, 2, 8, 128>}]} {
    %c8_i32 = arith.constant 8 : i32
    %0 = arith.muli %arg1, %c8_i32 : i32
    %c1_i32 = arith.constant 1 : i32
    %1 = arith.subi %0, %c1_i32 : i32
    %c0_i32 = arith.constant 0 : i32
    %2 = arith.maxsi %1, %c0_i32 : i32
    %c8_i32_0 = arith.constant 8 : i32
    %3 = arith.muli %arg1, %c8_i32_0 : i32
    %c8_i32_1 = arith.constant 8 : i32
    %4 = arith.addi %3, %c8_i32_1 : i32
    %c31_i32 = arith.constant 31 : i32
    %5 = arith.minsi %4, %c31_i32 : i32
    %c0_i32_2 = arith.constant 0 : i32
    %c0_i32_3 = arith.constant 0 : i32
    %c0_i32_4 = arith.constant 0 : i32
    %c0_i32_5 = arith.constant 0 : i32
    %6 = tpu.memref_slice %arg3[%arg0, %c0_i32_2, %2, %c0_i32_5] : memref<2x1x32x128xf32, #tpu.memory_space<any>> -> memref<1x1x1x128xf32, #tpu.memory_space<any>>
    %7 = tpu.memref_squeeze %6 : memref<1x1x1x128xf32, #tpu.memory_space<any>> -> memref<1x128xf32, #tpu.memory_space<any>>
    %c0_i32_6 = arith.constant 0 : i32
    %c0_i32_7 = arith.constant 0 : i32
    %8 = tpu.memref_slice %arg5[%c0_i32_3, %c0_i32_6, %c0_i32_7] : memref<2x1x128xf32, #tpu.memory_space<vmem>> -> memref<1x1x128xf32, #tpu.memory_space<vmem>>
    %9 = tpu.memref_squeeze %8 : memref<1x1x128xf32, #tpu.memory_space<vmem>> -> memref<1x128xf32, #tpu.memory_space<vmem>>
    %10 = tpu.memref_slice %arg6[%c0_i32_4] : memref<2x!tpu.dma_semaphore, #tpu.memory_space<semaphore_mem>> -> memref<1x!tpu.dma_semaphore, #tpu.memory_space<semaphore_mem>>
    %11 = tpu.memref_squeeze %10 : memref<1x!tpu.dma_semaphore, #tpu.memory_space<semaphore_mem>> -> memref<!tpu.dma_semaphore, #tpu.memory_space<semaphore_mem>>
    tpu.enqueue_dma source(%7 : memref<1x128xf32, #tpu.memory_space<any>>) target(%9 : memref<1x128xf32, #tpu.memory_space<vmem>>) target_semaphore(%11 : memref<!tpu.dma_semaphore, #tpu.memory_space<semaphore_mem>>)
    %c0_i32_8 = arith.constant 0 : i32
    %c1_i32_9 = arith.constant 1 : i32
    %c1_i32_10 = arith.constant 1 : i32
    %c0_i32_11 = arith.constant 0 : i32
    %12 = tpu.memref_slice %arg3[%arg0, %c0_i32_8, %5, %c0_i32_11] : memref<2x1x32x128xf32, #tpu.memory_space<any>> -> memref<1x1x1x128xf32, #tpu.memory_space<any>>
    %13 = tpu.memref_squeeze %12 : memref<1x1x1x128xf32, #tpu.memory_space<any>> -> memref<1x128xf32, #tpu.memory_space<any>>
    %c0_i32_12 = arith.constant 0 : i32
    %c0_i32_13 = arith.constant 0 : i32
    %14 = tpu.memref_slice %arg5[%c1_i32_9, %c0_i32_12, %c0_i32_13] : memref<2x1x128xf32, #tpu.memory_space<vmem>> -> memref<1x1x128xf32, #tpu.memory_space<vmem>>
    %15 = tpu.memref_squeeze %14 : memref<1x1x128xf32, #tpu.memory_space<vmem>> -> memref<1x128xf32, #tpu.memory_space<vmem>>
    %16 = tpu.memref_slice %arg6[%c1_i32_10] : memref<2x!tpu.dma_semaphore, #tpu.memory_space<semaphore_mem>> -> memref<1x!tpu.dma_semaphore, #tpu.memory_space<semaphore_mem>>
    %17 = tpu.memref_squeeze %16 : memref<1x!tpu.dma_semaphore, #tpu.memory_space<semaphore_mem>> -> memref<!tpu.dma_semaphore, #tpu.memory_space<semaphore_mem>>
    tpu.enqueue_dma source(%13 : memref<1x128xf32, #tpu.memory_space<any>>) target(%15 : memref<1x128xf32, #tpu.memory_space<vmem>>) target_semaphore(%17 : memref<!tpu.dma_semaphore, #tpu.memory_space<semaphore_mem>>)
    %c0 = arith.constant 0 : index
    %c0_14 = arith.constant 0 : index
    %c0_15 = arith.constant 0 : index
    %c0_16 = arith.constant 0 : index
    %18 = vector.load %arg2[%c0, %c0_14, %c0_15, %c0_16] : memref<1x1x8x128xf32, #tpu.memory_space<vmem>>, vector<1x1x8x128xf32>
    %19 = vector.shape_cast %18 : vector<1x1x8x128xf32> to vector<8x128xf32>
    %20 = tpu.iota {dimensions = array<i32: 1>} : vector<8x128xi32>
    %c127_i32 = arith.constant 127 : i32
    %21 = vector.broadcast %c127_i32 : i32 to vector<8x128xi32>
    %22 = arith.cmpi eq, %20, %21 : vector<8x128xi32>
    %c127_i32_17 = arith.constant 127 : i32
    %23 = tpu.dynamic_rotate %19 by %c127_i32_17 dim 1 : vector<8x128xf32>, i32 -> vector<8x128xf32>
    %cst = arith.constant 0.000000e+00 : f32
    %24 = vector.broadcast %cst : f32 to vector<8x128xf32>
    %25 = arith.select %22, %24, %23 : vector<8x128xi1>, vector<8x128xf32>
    %c0_i32_18 = arith.constant 0 : i32
    %26 = vector.broadcast %c0_i32_18 : i32 to vector<8x128xi32>
    %27 = arith.cmpi eq, %20, %26 : vector<8x128xi32>
    %c1_i32_19 = arith.constant 1 : i32
    %28 = tpu.dynamic_rotate %19 by %c1_i32_19 dim 1 : vector<8x128xf32>, i32 -> vector<8x128xf32>
    %cst_20 = arith.constant 0.000000e+00 : f32
    %29 = vector.broadcast %cst_20 : f32 to vector<8x128xf32>
    %30 = arith.select %27, %29, %28 : vector<8x128xi1>, vector<8x128xf32>
    %31 = arith.subf %25, %30 : vector<8x128xf32>
    %c0_21 = arith.constant 0 : index
    %c0_22 = arith.constant 0 : index
    %c0_23 = arith.constant 0 : index
    %c0_24 = arith.constant 0 : index
    %32 = vector.load %arg4[%c0_21, %c0_22, %c0_23, %c0_24] : memref<1x2x8x128xf32, #tpu.memory_space<vmem>>, vector<1x1x8x128xf32>
    %33 = vector.shape_cast %32 : vector<1x1x8x128xf32> to vector<8x128xf32>
    %34 = vector.shape_cast %31 : vector<8x128xf32> to vector<1x1x8x128xf32>
    tpu.vector_store %arg4[%c0_21, %c0_22, %c0_23, %c0_24], %34 {strides = array<i32>} : memref<1x2x8x128xf32, #tpu.memory_space<vmem>>, vector<1x1x8x128xf32>,
    %c0_i32_25 = arith.constant 0 : i32
    %c0_i32_26 = arith.constant 0 : i32
    %c0_i32_27 = arith.constant 0 : i32
    %c0_i32_28 = arith.constant 0 : i32
    %35 = tpu.memref_slice %arg3[%arg0, %c0_i32_25, %2, %c0_i32_28] : memref<2x1x32x128xf32, #tpu.memory_space<any>> -> memref<1x1x1x128xf32, #tpu.memory_space<any>>
    %36 = tpu.memref_squeeze %35 : memref<1x1x1x128xf32, #tpu.memory_space<any>> -> memref<1x128xf32, #tpu.memory_space<any>>
    %c0_i32_29 = arith.constant 0 : i32
    %c0_i32_30 = arith.constant 0 : i32
    %37 = tpu.memref_slice %arg5[%c0_i32_26, %c0_i32_29, %c0_i32_30] : memref<2x1x128xf32, #tpu.memory_space<vmem>> -> memref<1x1x128xf32, #tpu.memory_space<vmem>>
    %38 = tpu.memref_squeeze %37 : memref<1x1x128xf32, #tpu.memory_space<vmem>> -> memref<1x128xf32, #tpu.memory_space<vmem>>
    %39 = tpu.memref_slice %arg6[%c0_i32_27] : memref<2x!tpu.dma_semaphore, #tpu.memory_space<semaphore_mem>> -> memref<1x!tpu.dma_semaphore, #tpu.memory_space<semaphore_mem>>
    %40 = tpu.memref_squeeze %39 : memref<1x!tpu.dma_semaphore, #tpu.memory_space<semaphore_mem>> -> memref<!tpu.dma_semaphore, #tpu.memory_space<semaphore_mem>>
    tpu.wait_dma2 semaphore(%40 : memref<!tpu.dma_semaphore, #tpu.memory_space<semaphore_mem>>) src(%36 : memref<1x128xf32, #tpu.memory_space<any>>) dst(%38 : memref<1x128xf32, #tpu.memory_space<vmem>>)
    %c0_i32_31 = arith.constant 0 : i32
    %c1_i32_32 = arith.constant 1 : i32
    %c1_i32_33 = arith.constant 1 : i32
    %c0_i32_34 = arith.constant 0 : i32
    %41 = tpu.memref_slice %arg3[%arg0, %c0_i32_31, %5, %c0_i32_34] : memref<2x1x32x128xf32, #tpu.memory_space<any>> -> memref<1x1x1x128xf32, #tpu.memory_space<any>>
    %42 = tpu.memref_squeeze %41 : memref<1x1x1x128xf32, #tpu.memory_space<any>> -> memref<1x128xf32, #tpu.memory_space<any>>
    %c0_i32_35 = arith.constant 0 : i32
    %c0_i32_36 = arith.constant 0 : i32
    %43 = tpu.memref_slice %arg5[%c1_i32_32, %c0_i32_35, %c0_i32_36] : memref<2x1x128xf32, #tpu.memory_space<vmem>> -> memref<1x1x128xf32, #tpu.memory_space<vmem>>
    %44 = tpu.memref_squeeze %43 : memref<1x1x128xf32, #tpu.memory_space<vmem>> -> memref<1x128xf32, #tpu.memory_space<vmem>>
    %45 = tpu.memref_slice %arg6[%c1_i32_33] : memref<2x!tpu.dma_semaphore, #tpu.memory_space<semaphore_mem>> -> memref<1x!tpu.dma_semaphore, #tpu.memory_space<semaphore_mem>>
    %46 = tpu.memref_squeeze %45 : memref<1x!tpu.dma_semaphore, #tpu.memory_space<semaphore_mem>> -> memref<!tpu.dma_semaphore, #tpu.memory_space<semaphore_mem>>
    tpu.wait_dma2 semaphore(%46 : memref<!tpu.dma_semaphore, #tpu.memory_space<semaphore_mem>>) src(%42 : memref<1x128xf32, #tpu.memory_space<any>>) dst(%44 : memref<1x128xf32, #tpu.memory_space<vmem>>)
    %47 = tpu.iota {dimensions = array<i32: 0>} : vector<8x128xi32>
    %c8_i32_37 = arith.constant 8 : i32
    %48 = arith.muli %arg1, %c8_i32_37 : i32
    %49 = vector.broadcast %48 : i32 to vector<8x128xi32>
    %50 = arith.addi %49, %47 : vector<8x128xi32>
    %c1_i32_38 = arith.constant 1 : i32
    %51 = tpu.dynamic_rotate %19 by %c1_i32_38 dim 0 : vector<8x128xf32>, i32 -> vector<8x128xf32>
    %c0_i32_39 = arith.constant 0 : i32
    %52 = vector.broadcast %c0_i32_39 : i32 to vector<8x128xi32>
    %53 = arith.cmpi eq, %47, %52 : vector<8x128xi32>
    %c0_40 = arith.constant 0 : index
    %c0_41 = arith.constant 0 : index
    %c0_42 = arith.constant 0 : index
    %54 = vector.load %arg5[%c0_40, %c0_41, %c0_42] : memref<2x1x128xf32, #tpu.memory_space<vmem>>, vector<1x1x128xf32>
    %55 = vector.shape_cast %54 : vector<1x1x128xf32> to vector<1x128xf32>
    %56 = vector.shape_cast %55 : vector<1x128xf32> to vector<1x128xf32>
    %57 = vector.broadcast %56 : vector<1x128xf32> to vector<8x128xf32>
    %58 = arith.select %53, %57, %51 : vector<8x128xi1>, vector<8x128xf32>
    %c0_i32_43 = arith.constant 0 : i32
    %59 = vector.broadcast %c0_i32_43 : i32 to vector<8x128xi32>
    %60 = arith.cmpi eq, %50, %59 : vector<8x128xi32>
    %cst_44 = arith.constant 0.000000e+00 : f32
    %61 = vector.broadcast %cst_44 : f32 to vector<8x128xf32>
    %62 = arith.select %60, %61, %58 : vector<8x128xi1>, vector<8x128xf32>
    %c7_i32 = arith.constant 7 : i32
    %63 = tpu.dynamic_rotate %19 by %c7_i32 dim 0 : vector<8x128xf32>, i32 -> vector<8x128xf32>
    %c7_i32_45 = arith.constant 7 : i32
    %64 = vector.broadcast %c7_i32_45 : i32 to vector<8x128xi32>
    %65 = arith.cmpi eq, %47, %64 : vector<8x128xi32>
    %c1 = arith.constant 1 : index
    %c0_46 = arith.constant 0 : index
    %c0_47 = arith.constant 0 : index
    %66 = vector.load %arg5[%c1, %c0_46, %c0_47] : memref<2x1x128xf32, #tpu.memory_space<vmem>>, vector<1x1x128xf32>
    %67 = vector.shape_cast %66 : vector<1x1x128xf32> to vector<1x128xf32>
    %68 = vector.shape_cast %67 : vector<1x128xf32> to vector<1x128xf32>
    %69 = vector.broadcast %68 : vector<1x128xf32> to vector<8x128xf32>
    %70 = arith.select %65, %69, %63 : vector<8x128xi1>, vector<8x128xf32>
    %c31_i32_48 = arith.constant 31 : i32
    %71 = vector.broadcast %c31_i32_48 : i32 to vector<8x128xi32>
    %72 = arith.cmpi eq, %50, %71 : vector<8x128xi32>
    %cst_49 = arith.constant 0.000000e+00 : f32
    %73 = vector.broadcast %cst_49 : f32 to vector<8x128xf32>
    %74 = arith.select %72, %73, %70 : vector<8x128xi1>, vector<8x128xf32>
    %75 = arith.subf %74, %62 : vector<8x128xf32>
    %c0_50 = arith.constant 0 : index
    %c1_51 = arith.constant 1 : index
    %c0_52 = arith.constant 0 : index
    %c0_53 = arith.constant 0 : index
    %76 = vector.load %arg4[%c0_50, %c1_51, %c0_52, %c0_53] : memref<1x2x8x128xf32, #tpu.memory_space<vmem>>, vector<1x1x8x128xf32>
    %77 = vector.shape_cast %76 : vector<1x1x8x128xf32> to vector<8x128xf32>
    %78 = vector.shape_cast %75 : vector<8x128xf32> to vector<1x1x8x128xf32>
    tpu.vector_store %arg4[%c0_50, %c1_51, %c0_52, %c0_53], %78 {strides = array<i32>} : memref<1x2x8x128xf32, #tpu.memory_space<vmem>>, vector<1x1x8x128xf32>,
    return
  }
  func.func @transform_0(%arg0: i32, %arg1: i32) -> (i32, i32, i32, i32) {
    %c0_i32 = arith.constant 0 : i32
    %c0_i32_0 = arith.constant 0 : i32
    %c0_i32_1 = arith.constant 0 : i32
    return %arg0, %c0_i32, %arg1, %c0_i32_0 : i32, i32, i32, i32
  }
  func.func @transform_2(%arg0: i32, %arg1: i32) -> (i32, i32, i32, i32) {
    %c0_i32 = arith.constant 0 : i32
    %c0_i32_0 = arith.constant 0 : i32
    %c0_i32_1 = arith.constant 0 : i32
    return %arg0, %c0_i32, %arg1, %c0_i32_0 : i32, i32, i32, i32
  }
}

</mosaic_0001>

<bundles_post_ra>
// kernel: tpu_custom_call.1
= control target key start
LH: loop header
LB: loop body
LE: loop exit
PB: predicated region body
PF: predicated region fallthrough
CT: control target
= control target key end

     0   :  { %s857_s0 = inlined_call_operand.hbm [shape: f32[2,1,32,128], index: 0, kind: input, shape index: {}]   ;;  %s858_s1 = inlined_call_operand.hbm [shape: f32[2,1,32,128], index: 1, kind: input, shape index: {}]   ;;  %s859_s2 = inlined_call_operand.hbm [shape: f32[2,2,32,128], index: 2, kind: output, shape index: {}]  }
   0x1   :  { %864 = sst [smem:[#allocation23_spill]] %s857_s0 }
   0x2   :  { %7 = vsyncpa [#allocation5], 0 }
   0x3   :  { %9 = vsyncpa [#allocation5 + $0x1], 0 }
   0x4   :  { %10 = vsyncpa [#allocation6], 0 }
   0x5   :  { %12 = vsyncpa [#allocation6 + $0x1], 0  ;;  %s672_s9 = smov 0   ;;  %s674_s10 = smov 0  }
   0x6   :  { %s676_s11 = smov 0   ;;  %s678_s12 = smov 0  }
   0x7   :  { %s680_s13 = smov 0   ;;  %s682_s14 = smov 0  }
   0x8   :  { %s684_s15 = smov 0   ;;  %s686_s16 = smov 0  }
   0x9 LB: > { %865 = sst [smem:[#allocation18_spill]] %s640_s14  ;;  %s360_s17 = sadd.s32 4294967295, %s648_s16   ;;  %s648_s16 = sphi %s686_s16, %s18_s16   ;;  %s644_s15 = sphi %s684_s15, %s880_s15   ;;  %s640_s14 = sphi %s682_s14, %s879_s14   ;;  %s636_s13 = sphi %s680_s13, %s878_s13   ;;  %s632_s12 = sphi %s678_s12, %s877_s12   ;;  %s628_s11 = sphi %s676_s11, %s883_s11   ;;  %s624_s10 = sphi %s674_s10, %s882_s10   ;;  %s620_s9 = sphi %s672_s9, %s881_s9  }
   0xa   : > { %866 = sst [smem:[#allocation19_spill]] %s644_s15  ;;  %s361_s18 = sadd.s32 4294967294, %s648_s16  }
   0xb   : > { %s27_s19 = sadd.s32 1, %s640_s14  ;;  %s30_s20 = sadd.s32 1, %s644_s15 }
   0xc   : > { %p28_p0 = scmp.ge.s32.totalorder %s27_s19, 4  ;;  %s39_s21 = sadd.s32 1, %s628_s11 }
   0xd   : > { %p46_p1 = scmp.ne.s32.totalorder %s628_s11, %s624_s10  ;;  %p47_p2 = scmp.eq.s32.totalorder %s648_s16, 0 }
   0xe   : > { %s885_s19 = smov (%p28_p0, %s27_s19), 0  ;;  %s887_s20 = smov (!%p28_p0, %s30_s20), %s644_s15 }
   0xf   : > { %867 = sst [smem:[#allocation20_spill]] %s885_s19  ;;  %s35_s22 = ssub.s32 %s640_s14, %s885_s19 }
  0x10   : > { %p725_p3 = por %p47_p2, %p46_p1  ;;  %p32_p4 = scmp.ge.s32.totalorder %s887_s20, 2 }
  0x11   : > { %p52_p5 = scmp.ne.s32.totalorder %s624_s10, %s620_s9  ;;  %p53_p6 = scmp.eq.s32.totalorder %s360_s17, 0 }
  0x12   : > { %p78_p7 = scmp.eq.s32.totalorder %s360_s17, 7  ;;  %s889_s20 = smov (%p32_p4, %s887_s20), 0 }
  0x13   : > { %869 = sst [smem:[#allocation21_spill]] %s889_s20  ;;  %p733_p8 = por %p53_p6, %p52_p5 }
  0x14   : > { %p737_p9 = por %p78_p7, %p46_p1  ;;  %s34_s26 = ssub.s32 %s644_s15, %s889_s20 }
  0x15   : > { %p84_p10 = scmp.eq.s32.totalorder %s361_s18, 7  ;;  %s36_s27 = sor.u32 %s35_s22, %s34_s26 }
  0x16   : > { %p37_p11 = scmp.eq.s32.totalorder %s36_s27, 0  ;;  %p393_p13 = scmp.lt.s32.totalorder %s648_s16, 8 }
  0x17   : > { %p743_p12 = por %p84_p10, %p52_p5  ;;  %s104_s29 = sand.u32 1, %s628_s11  }
  0x18   : > { %s750_s30 = scalar_select %p37_p11, %s628_s11, %s39_s21  }
  0x19   : > { %s364_s3 = sshll.u32 %s104_s29, 3  ;;  %s365_s4 = sshll.u32 %s644_s15, 2 }
  0x1a   : > { %873 = sst [smem:[#allocation22_spill]] %s750_s30  ;;  %s112_s5 = sadd.s32 %s640_s14, %s365_s4 }
  0x1b   : > { %s108_s6 = scalar_lea.vmem [#allocation4], %s364_s3  ;;  %s366_s8 = sshll.u32 %s112_s5, 3 }
  0x1c   : > { %s118_s7 = sshll.u32 %s108_s6, 4  ;;  %s874_s0 = sld [smem:[#allocation23_spill]]  ;;  %s119_s7 = int_to_ptr.vmem [resolvable:$true] %s118_s7 }
  0x1d   : > { %p386_p0 = pnand %p393_p13, %p725_p3  ;;  %p367_p1 = scmp.ge.s32.totalorder %s648_s16, 1 }
  0x1e   : > { %s105_s27 = scalar_lea.sflag [#allocation5], %s104_s29  ;;  %p123_p2 = scmp.lt.s32.totalorder %s648_s16, 9 }
  0x20   : > { %p124_p4 = pnand %p367_p1, %p123_p2 }
  0x21   : > { %s762_s21 = sand.u32 (!%p124_p4), 1, %s624_s10  }
  0x22   : > { %s114_s22 = scalar_lea.hbm %s874_s0, %s366_s8  ;;  %127 = sbr.rel (%p124_p4) target bundleno = 200 (0xc8), region = 24 }
  0x23   : > { %s116_s26 = sshll.u32 %s114_s22, 4  ;;  %s368_s3 = sshll.u32 (!%p124_p4), %s762_s21, 3  ;;  %s117_s26 = int_to_ptr.hbm [resolvable:$true] %s116_s26 }
  0x24   : > { %388 = dma.hbm_to_vmem [thread:$0]  (!%p386_p0), %s117_s26, 128, %s119_s7, %s105_s27  }
  0x25   : > { %s130_s4 = scalar_lea.sflag (!%p124_p4), [#allocation5], %s762_s21  ;;  %s133_s5 = scalar_lea.vmem (!%p124_p4), [#allocation4], %s368_s3 }
  0x27   : > { %607 = dma.done.wait (%p733_p8), %s130_s4, 128  }
  0x28   : > { %609 = vsyncadd (%p733_p8), %s130_s4, 4294967168  ;;  %s771_s23 = sshll.u32 %s632_s12, 3  ;;  %s372_s6 = sshll.u32 %s636_s13, 5  ;;  %v780_v0 = vld [vmem:[%s133_s5] sm:$0xff] }
  0x29   : > { %s371_s29 = sadd.s32 4294967295, %s771_s23  ;;  %s157_s7 = sadd.s32 8, %s771_s23 }
  0x2a   : > { %p155_p3 = scmp.gt.s32.totalorder %s371_s29, 0  ;;  %s650_s8 = smov [#allocation2]  }
  0x2b   : > { %s172_s17 = sshll.u32 %s650_s8, 4  ;;  %p776_p5 = scmp.lt.s32.totalorder %s157_s7, 31  ;;  %s173_s17 = int_to_ptr.vmem [resolvable:$true] %s172_s17 }
  0x2c   : > { %s891_s29 = smov (!%p155_p3, %s371_s29), 0  ;;  %s651_s22 = smov 127  }
  0x2d   : > { %s161_s24 = sadd.s32 %s372_s6, %s891_s29  ;;  %197 = vrot.lane.b32.xlu0 %v780_v0, %s651_s22  ;;  %s652_s0 = smov [#allocation2 + $0x1]  }
  0x2e   : > { %s162_s3 = scalar_lea.hbm %s858_s1, %s161_s24  ;;  %s786_s20 = sshll.u32 %s652_s0, 4  ;;  %s190_s20 = int_to_ptr.vmem [resolvable:$true] %s786_s20 }
  0x2f   : > { %s170_s4 = sshll.u32 %s162_s3, 4  ;;  %s502_s29 = scalar_lea.hbm %s858_s1, 64  ;;  %s171_s4 = int_to_ptr.hbm [resolvable:$true] %s170_s4 }
  0x30   : > { %s498_s8 = sshra.s32 %s171_s4, 4  ;;  %s499_s8 = int_to_ptr.hbm [resolvable:$true] %s498_s8 }
  0x31   : > { %s500_s19 = scalar_lea.hbm %s499_s8, 1  ;;  %p503_p7 = scmp.lt.s32.totalorder %s499_s8, %s858_s1 }
  0x32   : > { %p501_p6 = scmp.ne.s32.totalorder %s499_s8, %s500_s19  ;;  %p504_p8 = scmp.lt.s32.totalorder %s502_s29, %s500_s19 }
  0x34   : > { %p505_p10 = por %p504_p8, %p503_p7 }
  0x36   : > { %p506_p11 = pnand %p505_p10, %p501_p6 }
  0x38   : > { %509 = shalt.err (!%p506_p11)  }
  0x39   : > { %175 = dma.hbm_to_vmem [thread:$0]  %s171_s4, 16, %s173_s17, [#allocation3] }
  0x3a   : > { %s893_s7 = smov (!%p776_p5, %s157_s7), 31  ;;  %s653_s15 = smov 1  }
  0x3b   : > { %s176_s0 = sadd.s32 %s372_s6, %s893_s7  ;;  %201 = vrot.lane.b32.xlu0 %v780_v0, %s653_s15 }
  0x3c   : > { %s177_s26 = scalar_lea.hbm %s858_s1, %s176_s0 }
  0x3d   : > { %s187_s14 = sshll.u32 %s177_s26, 4  ;;  %s188_s14 = int_to_ptr.hbm [resolvable:$true] %s187_s14 }
  0x3e   : > { %s522_s19 = sshra.s32 %s188_s14, 4  ;;  %s523_s19 = int_to_ptr.hbm [resolvable:$true] %s522_s19 }
  0x3f   : > { %s524_s30 = scalar_lea.hbm %s523_s19, 1  ;;  %p527_p0 = scmp.lt.s32.totalorder %s523_s19, %s858_s1 }
  0x40   : > { %p525_p13 = scmp.ne.s32.totalorder %s523_s19, %s524_s30  ;;  %p528_p1 = scmp.lt.s32.totalorder %s502_s29, %s524_s30 }
  0x42   : > { %p529_p2 = por %p528_p1, %p527_p0 }
  0x44   : > { %p530_p4 = pnand %p529_p2, %p525_p13 }
  0x46   : > { %533 = shalt.err (!%p530_p4)  }
  0x47   : > { %192 = dma.hbm_to_vmem [thread:$0]  %s188_s14, 16, %s190_s20, [#allocation3 + $0x1]  ;;  %v194_v1 = vlaneseq }
  0x48   : > { %s369_s6 = sshll.u32 %s762_s21, 4 }
  0x49   : > { %v195_v3 = vand.u32 127, %v194_v1  ;;  %s805_s7 = scalar_lea.vmem [#allocation7], %s369_s6 }
  0x4b   : > { %vm196_vm0 = vcmp.eq.s32.totalorder %v195_v3, 127  ;;  %vm200_vm1 = vcmp.eq.s32.totalorder %v195_v3, 0 }
  0x9f   : > { %v198_v2 = vpop.permute.xlu0 %197 }
  0xa0   : > { %v199_v5 = vsel %vm196_vm0, 0.0, %v198_v2 }
  0xad   : > { %v202_v4 = vpop.permute.xlu0 %201 }
  0xae   : > { %v203_v6 = vsel %vm200_vm1, 0.0, %v202_v4 }
  0xaf   : > { %v204_v7 = vsub.f32 %v199_v5, %v203_v6 }
  0xb1   : > { %205 = vst [vmem:[%s805_s7] sm:$0xff] %v204_v7 }
  0xb2   : > { %610 = dma.done.wait [#allocation3], 16 }
  0xb3   : > { %611 = vsyncadd [#allocation3], 4294967280 }
  0xb4   : > { %612 = dma.done.wait [#allocation3 + $0x1], 16 }
  0xb5   : > { %613 = vsyncadd [#allocation3 + $0x1], 4294967280  ;;  %v212_v8 = vshrl.u32 %v194_v1, 7  ;;  %v213_v9 = vstv %s771_s23  ;;  %s375_s20 = sshll.u32 %s636_s13, 3  ;;  %v215_v11 = vrot.slane %v780_v0, 7  ;;  %v224_v12 = vrot.slane %v780_v0, 1 }
  0xb6   : > { %s247_s18 = sadd.s32 %s632_s12, %s375_s20  ;;  %s250_s29 = sshll.u32 %s805_s7, 4  ;;  %v466_v13 = vld [vmem:[#allocation2] ss:$0 sm:$0xff]  ;;  %v467_v14 = vld [vmem:[#allocation2 + $0x1] ss:$0 sm:$0xff]  ;;  %s251_s29 = int_to_ptr.vmem [resolvable:$true] %s250_s29 }
  0xb7   : > { %v214_v10 = vadd.s32 %v213_v9, %v212_v8  ;;  %s376_s3 = sshll.u32 %s247_s18, 3  ;;  %vm216_vm2 = vcmp.eq.s32.totalorder %v212_v8, 0  ;;  %vm225_vm4 = vcmp.eq.s32.totalorder %v212_v8, 7  ;;  %s237_s13 = scalar_lea.sflag [#allocation6], %s762_s21 }
  0xb8   : > { %s249_s5 = scalar_lea.hbm %s859_s2, %s376_s3  ;;  %v221_v15 = vsel %vm216_vm2, %v466_v13, %v215_v11  ;;  %v230_v17 = vsel %vm225_vm4, %v467_v14, %v224_v12  ;;  %s566_s26 = scalar_lea.hbm %s859_s2, 128 }
  0xb9   : > { %vm222_vm3 = vcmp.eq.s32.totalorder %v214_v10, 0  ;;  %vm231_vm5 = vcmp.eq.s32.totalorder %v214_v10, 31  ;;  %s252_s12 = sshll.u32 %s249_s5, 4  ;;  %s253_s12 = int_to_ptr.hbm [resolvable:$true] %s252_s12 }
  0xba   : > { %v223_v16 = vsel %vm222_vm3, 0.0, %v221_v15  ;;  %v232_v18 = vsel %vm231_vm5, 0.0, %v230_v17  ;;  %s560_s23 = sshra.s32 %s253_s12, 4  ;;  %s561_s23 = int_to_ptr.hbm [resolvable:$true] %s560_s23 }
  0xbb   : > { %v233_v19 = vsub.f32 %v232_v18, %v223_v16  ;;  %s562_s0 = scalar_lea.hbm %s561_s23, 16  ;;  %p567_p7 = scmp.lt.s32.totalorder %s561_s23, %s859_s2 }
  0xbc   : > { %p563_p3 = scmp.ne.s32.totalorder %s561_s23, %s562_s0  ;;  %p568_p8 = scmp.lt.s32.totalorder %s566_s26, %s562_s0 }
  0xbd   : > { %373 = vst [vmem:[%s805_s7 + $0x8] sm:$0xff] %v233_v19 }
  0xbe   : > { %p564_p5 = pnand %p563_p3, %p737_p9  ;;  %p569_p10 = por %p568_p8, %p567_p7 }
  0xc0   : > { %p565_p6 = pneg %p564_p5 }
  0xc2   : > { %p570_p11 = pnand %p569_p10, %p565_p6 }
  0xc4   : > { %573 = shalt.err (!%p570_p11)
}
  0xc5   : > { %s654_s21 = smov 128   ;;  %s655_s19 = smov 512  }
  0xc6   : > { %s656_s30 = smov 8  }
  0xc7   : > { %383 = dma.vmem_to_hbm [thread:$0]  (%p737_p9), %s251_s29, 256, %s253_s12, %s237_s13, %s654_s21, %s655_s19, %s656_s30  }
  0xc8 PF: > { %p394_p13 = scmp.ge.s32.totalorder %s648_s16, 2  ;;  %s267_s17 = sand.u32 1, %s620_s9  }
  0xc9   : > { %s268_s27 = scalar_lea.sflag [#allocation6], %s267_s17 }
  0xca   : > { %p390_p0 = pnand %p394_p13, %p743_p12 }
  0xcc   : > { %p391_p1 = pneg %p390_p0 }
  0xce   : > { %615 = dma.done.wait (%p391_p1), %s268_s27, 256  }
  0xcf   : > { %617 = vsyncadd (%p391_p1), %s268_s27, 4294967040  ;;  %s18_s16 = sadd.s32 1, %s648_s16   ;;  %s876_s6 = sld [smem:[#allocation22_spill]] }
  0xd0   : > { %p15_p2 = scmp.ge.s32.totalorder %s18_s16, 10   ;;  %s877_s12 = sld [smem:[#allocation18_spill]] }
  0xd1   : > { %s878_s13 = sld [smem:[#allocation19_spill]]  ;;  %s881_s9 = smov %s624_s10 }
  0xd2   : > { %s879_s14 = sld [smem:[#allocation20_spill]]  ;;  %s882_s10 = smov %s628_s11 }
  0xd3   : > { %s880_s15 = sld [smem:[#allocation21_spill]]  ;;  %17 = sbr.rel (!%p15_p2) target bundleno = 9 (0x9), region = 83 }
  0xd5   : > { %s883_s11 = smov %s876_s6 }
  0xd8   :  { %274 = vsyncpa [#allocation5], 1 }
  0xd9   :  { %276 = vsyncpa [#allocation5 + $0x1], 1 }
  0xda   :  { %277 = vsyncpa [#allocation6], 1 }
  0xdb   :  { %279 = vsyncpa [#allocation6 + $0x1], 1 }
  0xdc   :  { %280 = vsyncmov [#allocation3] }
  0xdf   :  { %s281_s25 = vpop.sfrf %280 }
  0xe0   :  { %p379_p9 = scmp.ne.s32.totalorder %s281_s25, 0 }
  0xe2   :  { %285 = shalt.err (%p379_p9)  }
  0xe3   :  { %287 = vsyncmov [#allocation3 + $0x1] }
  0xe6   :  { %s288_s28 = vpop.sfrf %287 }
  0xe7   :  { %p380_p12 = scmp.ne.s32.totalorder %s288_s28, 0 }
  0xe9   :  { %292 = shalt.err (%p380_p12)  }

</bundles_post_ra>
